<compile_context>
chip_gen: v5e
topology: v5e:2x2
jax: 0.10.0
libtpu: 0.0.40
codegen_flags: <defaults>
</compile_context>

<pallas_src>
import functools

import jax
import jax.numpy as jnp
from jax.experimental import pallas as pl
from jax.experimental.pallas import tpu as pltpu


def bt_kernel_uv(idx_ref, ut_ref, vt_ref, out_ref):
    """General path: two resident (d, M) bf16 tables.

    idx_ref : (3, TB) int32    -- rows are [i, j, k] indices, lane-dense
    ut_ref  : (d, M)  bfloat16 -- u embedding table, transposed (resident)
    vt_ref  : (d, M)  bfloat16 -- v embedding table, transposed (resident)
    out_ref : (1, TB) float32  -- sigmoid(score_j - score_k), lane-dense
    """
    num_models = ut_ref.shape[1]

    i_row = idx_ref[0:1, :]                                       # (1, TB)
    j_row = idx_ref[1:2, :]
    k_row = idx_ref[2:3, :]

    # (M, 1) iota broadcast against (1, TB) rows -> (M, TB) one-hots.
    model_iota = jax.lax.broadcasted_iota(jnp.int32, (num_models, 1), 0)
    onehot_i = (i_row == model_iota).astype(jnp.bfloat16)         # (M, TB)
    onehot_diff = ((j_row == model_iota).astype(jnp.bfloat16)
                   - (k_row == model_iota).astype(jnp.bfloat16))  # (M, TB), {-1,0,+1}

    # Gathers as bf16 MXU matmuls with f32 accumulate: (d, M) @ (M, TB).
    u_i = jnp.dot(ut_ref[...], onehot_i, preferred_element_type=jnp.float32)
    v_diff = jnp.dot(vt_ref[...], onehot_diff, preferred_element_type=jnp.float32)

    # score[t] = u_i[:, t] . (v_j[:, t] - v_k[:, t])  -> sublane reduction.
    score = jnp.sum(u_i * v_diff, axis=0, keepdims=True)          # (1, TB)
    out_ref[...] = jax.nn.sigmoid(score)


def bt_kernel_s(idx_ref, s_ref, out_ref):
    """S-variant (num_models <= 2*d): one resident (M, M) bf16 table S = u @ v^T.

    score[t] = S[i_t, j_t] - S[i_t, k_t]
    """
    num_models = s_ref.shape[0]

    i_row = idx_ref[0:1, :]                                       # (1, TB)
    j_row = idx_ref[1:2, :]
    k_row = idx_ref[2:3, :]

    model_iota = jax.lax.broadcasted_iota(jnp.int32, (num_models, 1), 0)
    onehot_i = (i_row == model_iota).astype(jnp.float32)          # (M, TB), VPU only
    onehot_diff = ((j_row == model_iota).astype(jnp.bfloat16)
                   - (k_row == model_iota).astype(jnp.bfloat16))  # (M, TB)

    # Column t of (M, M) @ (M, TB) is S[:, j_t] - S[:, k_t].
    s_cols = jnp.dot(s_ref[...], onehot_diff, preferred_element_type=jnp.float32)

    # Select row i_t of each column with the one-hot mask, sublane reduce.
    score = jnp.sum(onehot_i * s_cols, axis=0, keepdims=True)     # (1, TB)
    out_ref[...] = jax.nn.sigmoid(score)


def _round_up(n, m):
    return ((n + m - 1) // m) * m


@functools.partial(jax.jit, static_argnames=("block_b",))
def vector_bt_forward(i_idx, j_idx, k_idx, u_weight, v_weight, block_b=1024):
    """Pallas equivalent of VectorBT.forward. Returns shape (B,) float32."""
    B = i_idx.shape[0]
    num_models, d = u_weight.shape

    # Batch tile: lane-dense (multiple of 128), capped at block_b, and capped so
    # the "parallel" batch grid has >= 2 tiles when B allows (v7x has 2 TCs).
    block_b = max(128, _round_up(block_b, 128))
    tb = min(block_b, _round_up(B, 128))
    if B > 128:
        tb = min(tb, _round_up((B + 1) // 2, 128))
    b_pad = _round_up(B, tb)
    grid_b = b_pad // tb

    def prep(idx):
        # Clamp to match JAX gather semantics; pad with a valid index (0).
        idx = jnp.clip(idx.astype(jnp.int32), 0, num_models - 1)
        idx = jnp.pad(idx, (0, b_pad - B))
        return idx.reshape(grid_b, tb)

    # Pack the three index vectors into one (G, 3, TB) array: one DMA per step.
    idx_all = jnp.stack([prep(i_idx), prep(j_idx), prep(k_idx)], axis=1)

    idx_spec = pl.BlockSpec((None, 3, tb), lambda g: (g, 0, 0))
    out_spec = pl.BlockSpec((None, 1, tb), lambda g: (g, 0, 0))
    out_shape = jax.ShapeDtypeStruct((grid_b, 1, tb), jnp.float32)
    cparams = pltpu.CompilerParams(dimension_semantics=("parallel",))

    # NOTE: if the weights are static across many calls, hoist the table prep
    # below (transpose / bf16 cast / S precompute) out of the per-batch forward.
    if num_models <= 2 * d:
        # S-variant: precompute S = u @ v^T once (f32 matmul, amortized over the
        # whole batch), keep only the (M, M) bf16 table resident in the kernel.
        s_t = jnp.dot(u_weight.astype(jnp.float32),
                      v_weight.astype(jnp.float32).T).astype(jnp.bfloat16)
        s_spec = pl.BlockSpec((num_models, num_models), lambda g: (0, 0),
                              pipeline_mode=pl.Buffered(1))  # constant block
        out = pl.pallas_call(
            bt_kernel_s,
            out_shape=out_shape,
            grid=(grid_b,),
            in_specs=[idx_spec, s_spec],
            out_specs=out_spec,
            compiler_params=cparams,
        )(idx_all, s_t)
    else:
        # Two-table path: transposed bf16 tables, batch axis on lanes.
        u_t = u_weight.T.astype(jnp.bfloat16)                     # (d, M)
        v_t = v_weight.T.astype(jnp.bfloat16)                     # (d, M)
        table_spec = lambda: pl.BlockSpec((d, num_models), lambda g: (0, 0),
                                          pipeline_mode=pl.Buffered(1))
        out = pl.pallas_call(
            bt_kernel_uv,
            out_shape=out_shape,
            grid=(grid_b,),
            in_specs=[idx_spec, table_spec(), table_spec()],
            out_specs=out_spec,
            compiler_params=cparams,
        )(idx_all, u_t, v_t)

    return out.reshape(b_pad)[:B]


def reference_forward(i_idx, j_idx, k_idx, u_weight, v_weight):
    u_i = u_weight[i_idx]
    v_j = v_weight[j_idx]
    v_k = v_weight[k_idx]
    score_j = jnp.sum(u_i * v_j, axis=-1)
    score_k = jnp.sum(u_i * v_k, axis=-1)
    return jax.nn.sigmoid(score_j - score_k)


def _run_case(key, num_models, d, batch):
    ku, kv, ki, kj, kk = jax.random.split(key, 5)
    # Deterministic parameter init matching nn.init.normal_(std=0.1).
    u_weight = (0.1 * jax.random.normal(ku, (num_models, d))).astype(jnp.float32)
    v_weight = (0.1 * jax.random.normal(kv, (num_models, d))).astype(jnp.float32)

    i_idx = jax.random.randint(ki, (batch,), 0, num_models, dtype=jnp.int32)
    j_idx = jax.random.randint(kj, (batch,), 0, num_models, dtype=jnp.int32)
    k_idx = jax.random.randint(kk, (batch,), 0, num_models, dtype=jnp.int32)

    out = vector_bt_forward(i_idx, j_idx, k_idx, u_weight, v_weight)
    out = jax.block_until_ready(out)

    ref = reference_forward(i_idx, j_idx, k_idx, u_weight, v_weight)
    assert out.shape == (batch,), out.shape
    # bf16 MXU inputs (f32 accumulate): relax tolerance vs. the f32 reference.
    assert jnp.allclose(out, ref, atol=5e-3, rtol=5e-3), (out, ref)


if __name__ == "__main__":
    key = jax.random.PRNGKey(0)
    k1, k2 = jax.random.split(key)

    # Small shapes matching the module spec (exercises the S-variant: M <= 2d).
    _run_case(k1, num_models=16, d=32, batch=8)

    # Larger model count (exercises the two-table path, padding, and a 2-tile
    # parallel batch grid).
    _run_case(k2, num_models=256, d=32, batch=300)

    print("KERNEL_OK")
</pallas_src>

<mosaic_0001>
module attributes {stable_mosaic.version = 11 : i64} {
  func.func @bt_kernel_s(%arg0: i32, %arg1: memref<1x3x128xi32, #tpu.memory_space<vmem>>, %arg2: memref<16x16xbf16, #tpu.memory_space<vmem>>, %arg3: memref<1x1x128xf32, #tpu.memory_space<vmem>>) attributes {dimension_semantics = [#tpu.dimension_semantics<parallel>], iteration_bounds = array<i64: 1>, scalar_prefetch = 0 : i64, scratch_operands = 0 : i64, tpu.core_type = #tpu.core_type<tc>, window_params = [{transform_indices = @transform_0, window_bounds = array<i64: 1, 3, 128>}, {pipeline_mode = #tpu.pipeline_mode<synchronous>, transform_indices = @transform_1, window_bounds = array<i64: 16, 16>}, {transform_indices = @transform_2, window_bounds = array<i64: 1, 1, 128>}]} {
    %c0 = arith.constant 0 : index
    %c0_0 = arith.constant 0 : index
    %c0_1 = arith.constant 0 : index
    %0 = vector.load %arg1[%c0, %c0_0, %c0_1] : memref<1x3x128xi32, #tpu.memory_space<vmem>>, vector<1x1x128xi32>
    %1 = vector.shape_cast %0 : vector<1x1x128xi32> to vector<1x128xi32>
    %c0_2 = arith.constant 0 : index
    %c1 = arith.constant 1 : index
    %c0_3 = arith.constant 0 : index
    %2 = vector.load %arg1[%c0_2, %c1, %c0_3] : memref<1x3x128xi32, #tpu.memory_space<vmem>>, vector<1x1x128xi32>
    %3 = vector.shape_cast %2 : vector<1x1x128xi32> to vector<1x128xi32>
    %c0_4 = arith.constant 0 : index
    %c2 = arith.constant 2 : index
    %c0_5 = arith.constant 0 : index
    %4 = vector.load %arg1[%c0_4, %c2, %c0_5] : memref<1x3x128xi32, #tpu.memory_space<vmem>>, vector<1x1x128xi32>
    %5 = vector.shape_cast %4 : vector<1x1x128xi32> to vector<1x128xi32>
    %6 = tpu.iota {dimensions = array<i32: 0>} : vector<16x1xi32>
    %7 = vector.broadcast %1 : vector<1x128xi32> to vector<16x128xi32>
    %8 = vector.broadcast %6 : vector<16x1xi32> to vector<16x128xi32>
    %9 = arith.cmpi eq, %7, %8 : vector<16x128xi32>
    %10 = arith.extui %9 : vector<16x128xi1> to vector<16x128xi32>
    %11 = arith.sitofp %10 : vector<16x128xi32> to vector<16x128xf32>
    %12 = vector.broadcast %3 : vector<1x128xi32> to vector<16x128xi32>
    %13 = vector.broadcast %6 : vector<16x1xi32> to vector<16x128xi32>
    %14 = arith.cmpi eq, %12, %13 : vector<16x128xi32>
    %15 = arith.extui %14 : vector<16x128xi1> to vector<16x128xi32>
    %16 = arith.sitofp %15 : vector<16x128xi32> to vector<16x128xf32>
    %17 = arith.truncf %16 : vector<16x128xf32> to vector<16x128xbf16>
    %18 = vector.broadcast %5 : vector<1x128xi32> to vector<16x128xi32>
    %19 = vector.broadcast %6 : vector<16x1xi32> to vector<16x128xi32>
    %20 = arith.cmpi eq, %18, %19 : vector<16x128xi32>
    %21 = arith.extui %20 : vector<16x128xi1> to vector<16x128xi32>
    %22 = arith.sitofp %21 : vector<16x128xi32> to vector<16x128xf32>
    %23 = arith.truncf %22 : vector<16x128xf32> to vector<16x128xbf16>
    %24 = arith.subf %17, %23 : vector<16x128xbf16>
    %c0_6 = arith.constant 0 : index
    %c0_7 = arith.constant 0 : index
    %25 = vector.load %arg2[%c0_6, %c0_7] : memref<16x16xbf16, #tpu.memory_space<vmem>>, vector<16x16xbf16>
    %cst = arith.constant dense<0.000000e+00> : vector<16x128xf32>
    %26 = tpu.matmul %25, %24, %cst {dimension_numbers = #tpu.dot_dimension_numbers<[1], [0], [0], [1], [0, 0, 1, 1], [], []>} : vector<16x16xbf16>, vector<16x128xbf16>, vector<16x128xf32> -> vector<16x128xf32>
    %27 = arith.mulf %11, %26 : vector<16x128xf32>
    %cst_8 = arith.constant dense<0.000000e+00> : vector<128xf32>
    %28 = vector.multi_reduction <add>, %27, %cst_8 [0] : vector<16x128xf32> to vector<128xf32>
    %29 = vector.shape_cast %28 : vector<128xf32> to vector<1x128xf32>
    %30 = arith.negf %29 : vector<1x128xf32>
    %31 = math.exp %30 : vector<1x128xf32>
    %cst_9 = arith.constant 1.000000e+00 : f32
    %32 = vector.broadcast %cst_9 : f32 to vector<1x128xf32>
    %33 = arith.addf %32, %31 : vector<1x128xf32>
    %34 = arith.divf %32, %33 : vector<1x128xf32>
    %c0_10 = arith.constant 0 : index
    %c0_11 = arith.constant 0 : index
    %c0_12 = arith.constant 0 : index
    %35 = vector.load %arg3[%c0_10, %c0_11, %c0_12] : memref<1x1x128xf32, #tpu.memory_space<vmem>>, vector<1x1x128xf32>
    %36 = vector.shape_cast %35 : vector<1x1x128xf32> to vector<1x128xf32>
    %37 = vector.shape_cast %34 : vector<1x128xf32> to vector<1x1x128xf32>
    tpu.vector_store %arg3[%c0_10, %c0_11, %c0_12], %37 {strides = array<i32>} : memref<1x1x128xf32, #tpu.memory_space<vmem>>, vector<1x1x128xf32>,
    return
  }
  func.func @transform_0(%arg0: i32) -> (i32, i32, i32) {
    %c0_i32 = arith.constant 0 : i32
    %c0_i32_0 = arith.constant 0 : i32
    %c0_i32_1 = arith.constant 0 : i32
    return %arg0, %c0_i32, %c0_i32_0 : i32, i32, i32
  }
  func.func @transform_1(%arg0: i32) -> (i32, i32) {
    %c0_i32 = arith.constant 0 : i32
    %c0_i32_0 = arith.constant 0 : i32
    %c0_i32_1 = arith.constant 0 : i32
    return %c0_i32, %c0_i32_0 : i32, i32
  }
  func.func @transform_2(%arg0: i32) -> (i32, i32, i32) {
    %c0_i32 = arith.constant 0 : i32
    %c0_i32_0 = arith.constant 0 : i32
    %c0_i32_1 = arith.constant 0 : i32
    return %arg0, %c0_i32, %c0_i32_0 : i32, i32, i32
  }
}

</mosaic_0001>

<bundles_post_ra>
// kernel: vector_bt_forward.1
= control target key start
LH: loop header
LB: loop body
LE: loop exit
PB: predicated region body
PF: predicated region fallthrough
CT: control target
= control target key end

     0   :  { %v15_v0 = vlaneseq  ;;  %v129_v6 = vmov 0.0   ;;  %vm57_vm5 = vcmask 130048   ;;  %s160_s0 = inlined_call_operand.vmem [shape: s32[1,3,128], index: 0, kind: input, shape index: {}]   ;;  %s161_s1 = inlined_call_operand.vmem [shape: bf16[16,16], index: 1, kind: input, shape index: {}]   ;;  %s162_s2 = inlined_call_operand.vmem [shape: f32[1,1,128], index: 2, kind: output, shape index: {}]  }
   0x1   :  { %v122_v1 = vld [vmem:[%s160_s0 + $0x1] ss:$0 sm:$0xff]  ;;  %v123_v3 = vld [vmem:[%s160_s0 + $0x2] ss:$0 sm:$0xff]  ;;  %v124_v4 = vld [vmem:[%s160_s0] ss:$0 sm:$0xff] }
   0x2   :  { %v16_v2 = vshrl.u32 %v15_v0, 7  ;;  %v120_v14 = vld [vmem:[%s161_s1] sm:$0xff] }
   0x4   :  { %v17_v5 = vadd.s32 8, %v16_v2  ;;  %vm26_vm0 = vcmp.eq.s32.totalorder %v122_v1, %v16_v2  ;;  %vm35_vm1 = vcmp.eq.s32.totalorder %v123_v3, %v16_v2  ;;  %vm19_vm2 = vcmp.eq.s32.totalorder %v124_v4, %v16_v2 }
   0x5   :  { %v110_v7 = vsel %vm26_vm0, 1.0, %v129_v6  ;;  %v112_v8 = vsel %vm35_vm1, 1.0, %v129_v6  ;;  %v108_v16 = vsel %vm19_vm2, 1.0, %v129_v6 }
   0x6   :  { %vm27_vm3 = vcmp.eq.s32.totalorder %v122_v1, %v17_v5  ;;  %vm36_vm4 = vcmp.eq.s32.totalorder %v123_v3, %v17_v5  ;;  %v47_v9 = vsub.f32 %v110_v7, %v112_v8  ;;  %vm20_vm6 = vcmp.eq.s32.totalorder %v124_v4, %v17_v5 }
   0x7   :  { %v111_v10 = vsel %vm27_vm3, 1.0, %v129_v6  ;;  %v113_v11 = vsel %vm36_vm4, 1.0, %v129_v6  ;;  %v109_v17 = vsel %vm20_vm6, 1.0, %v129_v6 }
   0x8   :  { %v48_v12 = vsub.f32 %v111_v10, %v113_v11 }
   0xa   :  { %v49_v13 = vpack.c.bf16 %v48_v12, %v47_v9 }
   0xc   :  { %68 = vmatpush.bf16.msra.mxu0 %v49_v13 }
   0xf   :  { %118 = vmatmul.msk.bf16.vlgmr.msra.gmra.mxu0 %vm57_vm5, %v120_v14 }
  0x8c   :  { %v70_v15 = vpop.f32.mrf.mxu0 }
  0x8d   :  { %v75_v19 = vmul.f32 %v108_v16, %v70_v15 }
  0x94   :  { %v72_v18 = vpop.f32.mrf.mxu0 }
  0x95   :  { %v76_v20 = vmul.f32 %v109_v17, %v72_v18 }
  0x97   :  { %v77_v21 = vadd.f32 %v76_v20, %v75_v19 }
  0x99   :  { %v78_v22 = vrot.slane %v77_v21, 4 }
  0x9b   :  { %v79_v23 = vadd.f32 %v78_v22, %v77_v21 }
  0x9d   :  { %v80_v24 = vrot.slane %v79_v23, 2 }
  0x9f   :  { %v81_v25 = vadd.f32 %v80_v24, %v79_v23 }
  0xa1   :  { %v82_v26 = vrot.slane %v81_v25, 1 }
  0xa3   :  { %v83_v27 = vadd.f32 %v82_v26, %v81_v25 }
  0xa5   :  { %v119_v28 = vmul.f32 -1.442695, %v83_v27 }
  0xa7   :  { %125 = vpow2.f32 %v119_v28 }
  0xad   :  { %v126_v29 = vpop.eup %125 }
  0xae   :  { %v87_v30 = vadd.f32 1.0, %v126_v29 }
  0xb0   :  { %127 = vrcp.f32 %v87_v30  ;;  %v99_v34 = vand.u32 2147483648, %v87_v30  ;;  %v97_v36 = vand.u32 2147483647, %v87_v30  ;;  %vm93_vm8 = vweird.f32 %v87_v30 }
  0xb2   :  { %v100_v38 = vor.u32 1.1754944e-38, %v99_v34  ;;  %vm98_vm10 = vcmp.eq.f32.partialorder %v97_v36, 8.507059e+37 }
  0xb6   :  { %v128_v31 = vpop.eup %127 }
  0xb7   :  { %v89_v32 = vmul.f32 %v128_v31, %v87_v30  ;;  %vm94_vm7 = vweird.f32 %v128_v31 }
  0xb8   :  { %vm95_vm9 = vmor %vm93_vm8, %vm94_vm7 }
  0xb9   :  { %v90_v33 = vsub.f32 1.0, %v89_v32 }
  0xbb   :  { %v91_v35 = vmul.f32 %v128_v31, %v90_v33 }
  0xbd   :  { %v92_v37 = vadd.f32 %v128_v31, %v91_v35 }
  0xbf   :  { %v96_v39 = vsel %vm95_vm9, %v128_v31, %v92_v37 }
  0xc0   :  { %v101_v40 = vsel %vm98_vm10, %v100_v38, %v96_v39 }
  0xc1   :  { %103 = vst [vmem:[%s162_s2] sm:$0x1] %v101_v40 }

</bundles_post_ra>
